<compile_context>
chip_gen: v5e
topology: v5e:2x2
jax: 0.10.0
libtpu: 0.0.40
codegen_flags: <defaults>
</compile_context>

<pallas_src>
import jax
import jax.numpy as jnp
from jax.experimental import pallas as pl
from jax.experimental.pallas import tpu as pltpu


def _round_up(x, m):
    return ((x + m - 1) // m) * m


def pack_params(params):
    """Pre-transpose / pad / fuse PyTorch-layout parameters once, outside the kernel."""
    emb = jnp.asarray(params["embedding"], jnp.float32)           # (V, H)
    w_ih = jnp.asarray(params["w_ih"], jnp.float32)               # (3H, H), gates r,z,n
    w_hh = jnp.asarray(params["w_hh"], jnp.float32)               # (3H, H)
    b_ih = jnp.asarray(params["b_ih"], jnp.float32).reshape(-1)   # (3H,)
    b_hh = jnp.asarray(params["b_hh"], jnp.float32).reshape(-1)   # (3H,)

    V, H = emb.shape
    Hp = _round_up(max(H, 128), 128)   # lane-dense hidden size

    # Embedding as (V, 1, Hp): gathered block (1, 1, Hp) has its last two dims
    # equal to the full array dims; V is indexed via the scalar-prefetched token.
    emb_p = jnp.zeros((V, 1, Hp), jnp.float32).at[:, 0, :H].set(emb)

    def pad_gates_t(w):
        # (3H, H) -> (Hp, 3Hp): transposed, each gate at a 128-aligned lane offset.
        out = jnp.zeros((Hp, 3 * Hp), jnp.float32)
        for g in range(3):
            out = out.at[:H, g * Hp:g * Hp + H].set(w[g * H:(g + 1) * H, :].T)
        return out

    # Fused weight [W_ih^T | W_hh^T] -> (Hp, 6Hp): one MXU matmul per GRU layer.
    w_cat = jnp.concatenate([pad_gates_t(w_ih), pad_gates_t(w_hh)], axis=1)

    def pad_gates_b(b):
        return (jnp.zeros((3, Hp), jnp.float32)
                .at[:, :H].set(b.reshape(3, H)).reshape(1, 3 * Hp))

    b_cat = jnp.concatenate([pad_gates_b(b_ih), pad_gates_b(b_hh)], axis=0)  # (2, 3Hp)

    return {"emb": emb_p, "w": w_cat, "b": b_cat, "V": V, "H": H, "Hp": Hp}


def _make_kernel(Hp, n_layers):
    H3, H6 = 3 * Hp, 6 * Hp

    def gru_layer(x, h, w, b_ih, b_hh):
        xh = jnp.concatenate([x, h], axis=0)                        # (2, Hp)
        g = jnp.dot(xh, w, preferred_element_type=jnp.float32)      # (2, 6Hp) - one MXU pass
        gi = g[0:1, 0:H3] + b_ih                                    # x @ W_ih^T + b_ih
        gh = g[1:2, H3:H6] + b_hh                                   # h @ W_hh^T + b_hh
        r = jax.nn.sigmoid(gi[:, 0:Hp] + gh[:, 0:Hp])
        z = jax.nn.sigmoid(gi[:, Hp:2 * Hp] + gh[:, Hp:2 * Hp])
        n = jnp.tanh(gi[:, 2 * Hp:H3] + r * gh[:, 2 * Hp:H3])
        h_new = (1.0 - z) * n + z * h
        return h_new, h_new                                         # output feeds next layer

    def kernel(toks_ref,   # SMEM (T,) int32 scalar-prefetch (consumed by index_maps)
               emb_ref,    # (1, 1, Hp)  gathered embedding row for this timestep
               w_ref,      # (Hp, 6Hp)   fused [W_ih^T | W_hh^T]   (resident)
               b_ref,      # (2, 3Hp)    [b_ih ; b_hh]             (resident)
               h0_ref,     # (1, Hp)     initial hidden
               out_ref,    # (T, Hp)     all per-step hiddens      (resident accumulator)
               h_vmem):    # scratch (1, Hp) carried hidden state
        del toks_ref
        t = pl.program_id(0)

        @pl.when(t == 0)
        def _():
            h_vmem[...] = h0_ref[...]

        x = emb_ref[0]                 # (1, Hp)
        h = h_vmem[...]
        w = w_ref[...]
        b_ih = b_ref[0:1, :]
        b_hh = b_ref[1:2, :]

        if n_layers <= 4:              # small static counts: full unroll
            for _ in range(n_layers):
                x, h = gru_layer(x, h, w, b_ih, b_hh)
        else:                          # large counts: bounded live ranges
            x, h = jax.lax.fori_loop(
                0, n_layers,
                lambda i, c: gru_layer(c[0], c[1], w, b_ih, b_hh),
                (x, h))

        h_vmem[...] = h
        out_ref[pl.ds(t, 1), :] = h    # lane-dense row store into resident slab

    return kernel


def encoder_rnn_encode(packed, tokens, hidden, *, n_layers=1):
    """Run the EncoderRNN over a token sequence inside ONE pallas_call.

    tokens : int (T,)   hidden : float32 (1, 1, H)
    returns (outputs (T, H), final_hidden (1, 1, H))
    """
    V, H, Hp = packed["V"], packed["H"], packed["Hp"]
    T = int(tokens.shape[0])

    toks = jnp.clip(tokens.astype(jnp.int32), 0, V - 1)   # guard OOB token indices
    h0 = jnp.zeros((1, Hp), jnp.float32).at[:, :H].set(hidden.reshape(1, H))

    kernel = _make_kernel(Hp, n_layers)

    outs = pl.pallas_call(
        kernel,
        out_shape=jax.ShapeDtypeStruct((T, Hp), jnp.float32),
        grid_spec=pltpu.PrefetchScalarGridSpec(
            num_scalar_prefetch=1,
            grid=(T,),
            in_specs=[
                # gather exactly one embedding row per timestep via the prefetched token
                pl.BlockSpec((1, 1, Hp), lambda t, tok_ref: (tok_ref[t], 0, 0)),
                # weights/biases/h0: constant block index -> DMA'd once, stay resident
                pl.BlockSpec((Hp, 6 * Hp), lambda t, tok_ref: (0, 0)),
                pl.BlockSpec((2, 3 * Hp), lambda t, tok_ref: (0, 0)),
                pl.BlockSpec((1, Hp), lambda t, tok_ref: (0, 0)),
            ],
            out_specs=pl.BlockSpec((T, Hp), lambda t, tok_ref: (0, 0)),
            scratch_shapes=[pltpu.VMEM((1, Hp), jnp.float32)],
        ),
        compiler_params=pltpu.CompilerParams(
            dimension_semantics=("arbitrary",)),   # sequential: hidden-state carry
    )(toks, packed["emb"], packed["w"], packed["b"], h0)

    outputs = outs[:, :H]
    final_hidden = outputs[T - 1].reshape(1, 1, H)
    return outputs, final_hidden


def encoder_rnn_forward(packed, token, hidden, *, n_layers=1):
    """Mirrors EncoderRNN.forward(input, hidden) for a single token.

    token : int (1,)   hidden : float32 (1, 1, H)
    returns (output, hidden), each (1, 1, H)  (identical values, as in the module)
    """
    outputs, final_hidden = encoder_rnn_encode(packed, token, hidden, n_layers=n_layers)
    out = outputs[0].reshape(1, 1, packed["H"])
    return out, final_hidden


# ----------------------------- pure-JAX reference -----------------------------

def reference_forward(params, token, hidden, *, n_layers=1):
    """Matches torch.nn.GRU semantics (gate order r,z,n) for a single token."""
    emb, w_ih, w_hh, b_ih, b_hh = (params["embedding"], params["w_ih"],
                                   params["w_hh"], params["b_ih"], params["b_hh"])
    H = emb.shape[1]
    x = emb[token[0]][None, :]
    h = hidden.reshape(1, H)
    for _ in range(n_layers):
        gi = x @ w_ih.T + b_ih
        gh = h @ w_hh.T + b_hh
        r = jax.nn.sigmoid(gi[:, 0:H] + gh[:, 0:H])
        z = jax.nn.sigmoid(gi[:, H:2 * H] + gh[:, H:2 * H])
        n = jnp.tanh(gi[:, 2 * H:] + r * gh[:, 2 * H:])
        h = (1.0 - z) * n + z * h
        x = h
    return x.reshape(1, 1, H), h.reshape(1, 1, H)


def reference_encode(params, tokens, hidden, *, n_layers=1):
    outs, h = [], hidden
    for t in range(tokens.shape[0]):
        o, h = reference_forward(params, tokens[t:t + 1], h, n_layers=n_layers)
        outs.append(o.reshape(-1))
    return jnp.stack(outs), h


def init_params(key, input_size, hidden_size):
    H = hidden_size
    k = 1.0 / jnp.sqrt(jnp.float32(H))
    keys = jax.random.split(key, 5)
    return {
        "embedding": jax.random.normal(keys[0], (input_size, H), jnp.float32),
        "w_ih": jax.random.uniform(keys[1], (3 * H, H), jnp.float32, -k, k),
        "w_hh": jax.random.uniform(keys[2], (3 * H, H), jnp.float32, -k, k),
        "b_ih": jax.random.uniform(keys[3], (1, 3 * H), jnp.float32, -k, k),
        "b_hh": jax.random.uniform(keys[4], (1, 3 * H), jnp.float32, -k, k),
    }


if __name__ == "__main__":
    input_size = 16    # vocab size
    hidden_size = 32
    seq_len = 8

    key = jax.random.PRNGKey(0)
    params = init_params(key, input_size, hidden_size)
    packed = pack_params(params)

    # --- single-token forward (exactly EncoderRNN.forward), n_layers = 1 ---
    token = jnp.array([3], dtype=jnp.int32)
    hidden0 = jnp.zeros((1, 1, hidden_size), jnp.float32)   # EncoderRNN.initHidden()

    out, h_out = encoder_rnn_forward(packed, token, hidden0, n_layers=1)
    jax.block_until_ready((out, h_out))
    ref_out, ref_h = reference_forward(params, token, hidden0, n_layers=1)
    assert out.shape == (1, 1, hidden_size) and h_out.shape == (1, 1, hidden_size)
    assert jnp.allclose(out, ref_out, atol=1e-5), "single-token output mismatch"
    assert jnp.allclose(h_out, ref_h, atol=1e-5), "single-token hidden mismatch"

    # --- whole-sequence encode in one pallas_call, n_layers = 2 ---
    tokens = jax.random.randint(jax.random.PRNGKey(1), (seq_len,), 0, input_size)
    seq_out, seq_h = encoder_rnn_encode(packed, tokens, hidden0, n_layers=2)
    jax.block_until_ready((seq_out, seq_h))
    ref_seq_out, ref_seq_h = reference_encode(params, tokens, hidden0, n_layers=2)
    assert seq_out.shape == (seq_len, hidden_size)
    assert jnp.allclose(seq_out, ref_seq_out, atol=1e-5), "sequence outputs mismatch"
    assert jnp.allclose(seq_h, ref_seq_h, atol=1e-5), "sequence final hidden mismatch"

    print("KERNEL_OK")
</pallas_src>

<mosaic_0001>
module attributes {stable_mosaic.version = 11 : i64} {
  func.func @kernel(%arg0: i32, %arg1: memref<1xi32, #tpu.memory_space<smem>>, %arg2: memref<1x1x128xf32, #tpu.memory_space<vmem>>, %arg3: memref<128x768xf32, #tpu.memory_space<vmem>>, %arg4: memref<2x384xf32, #tpu.memory_space<vmem>>, %arg5: memref<1x128xf32, #tpu.memory_space<vmem>>, %arg6: memref<1x128xf32, #tpu.memory_space<vmem>>, %arg7: memref<1x128xf32, #tpu.memory_space<vmem>>) attributes {dimension_semantics = [#tpu.dimension_semantics<arbitrary>], iteration_bounds = array<i64: 1>, scalar_prefetch = 1 : i64, scratch_operands = 1 : i64, tpu.core_type = #tpu.core_type<tc>, window_params = [{transform_indices = @transform_0, window_bounds = array<i64: 1, 1, 128>}, {pipeline_mode = #tpu.pipeline_mode<synchronous>, transform_indices = @transform_1, window_bounds = array<i64: 128, 768>}, {pipeline_mode = #tpu.pipeline_mode<synchronous>, transform_indices = @transform_2, window_bounds = array<i64: 2, 384>}, {pipeline_mode = #tpu.pipeline_mode<synchronous>, transform_indices = @transform_3, window_bounds = array<i64: 1, 128>}, {pipeline_mode = #tpu.pipeline_mode<synchronous>, transform_indices = @transform_4, window_bounds = array<i64: 1, 128>}]} {
    %c0_i32 = arith.constant 0 : i32
    %0 = arith.cmpi eq, %arg0, %c0_i32 : i32
    %1 = arith.extui %0 : i1 to i32
    %c0_i32_0 = arith.constant 0 : i32
    %2 = arith.cmpi ne, %1, %c0_i32_0 : i32
    scf.if %2 {
      %c0_16 = arith.constant 0 : index
      %c0_17 = arith.constant 0 : index
      %44 = vector.load %arg5[%c0_16, %c0_17] : memref<1x128xf32, #tpu.memory_space<vmem>>, vector<1x128xf32>
      %c0_18 = arith.constant 0 : index
      %c0_19 = arith.constant 0 : index
      %45 = vector.load %arg7[%c0_18, %c0_19] : memref<1x128xf32, #tpu.memory_space<vmem>>, vector<1x128xf32>
      tpu.vector_store %arg7[%c0_18, %c0_19], %44 {strides = array<i32>} : memref<1x128xf32, #tpu.memory_space<vmem>>, vector<1x128xf32>,
    } else {
    }
    %c0 = arith.constant 0 : index
    %c0_1 = arith.constant 0 : index
    %c0_2 = arith.constant 0 : index
    %3 = vector.load %arg2[%c0, %c0_1, %c0_2] : memref<1x1x128xf32, #tpu.memory_space<vmem>>, vector<1x1x128xf32>
    %4 = vector.shape_cast %3 : vector<1x1x128xf32> to vector<1x128xf32>
    %c0_3 = arith.constant 0 : index
    %c0_4 = arith.constant 0 : index
    %5 = vector.load %arg7[%c0_3, %c0_4] : memref<1x128xf32, #tpu.memory_space<vmem>>, vector<1x128xf32>
    %c0_5 = arith.constant 0 : index
    %c0_6 = arith.constant 0 : index
    %6 = vector.load %arg3[%c0_5, %c0_6] : memref<128x768xf32, #tpu.memory_space<vmem>>, vector<128x768xf32>
    %c0_7 = arith.constant 0 : index
    %c0_8 = arith.constant 0 : index
    %7 = vector.load %arg4[%c0_7, %c0_8] : memref<2x384xf32, #tpu.memory_space<vmem>>, vector<1x384xf32>
    %c1 = arith.constant 1 : index
    %c0_9 = arith.constant 0 : index
    %8 = vector.load %arg4[%c1, %c0_9] : memref<2x384xf32, #tpu.memory_space<vmem>>, vector<1x384xf32>
    %9 = tpu.concatenate %4, %5 in 0 : vector<1x128xf32>, vector<1x128xf32> -> vector<2x128xf32>
    %cst = arith.constant dense<0.000000e+00> : vector<2x768xf32>
    %10 = tpu.matmul %9, %6, %cst {dimension_numbers = #tpu.dot_dimension_numbers<[1], [0], [0], [1], [0, 0, 1, 1], [], []>} : vector<2x128xf32>, vector<128x768xf32>, vector<2x768xf32> -> vector<2x768xf32>
    %11 = vector.extract_strided_slice %10 {offsets = [0, 0], sizes = [1, 384], strides = [1, 1]} : vector<2x768xf32> to vector<1x384xf32>
    %12 = arith.addf %11, %7 : vector<1x384xf32>
    %13 = vector.extract_strided_slice %10 {offsets = [1, 384], sizes = [1, 384], strides = [1, 1]} : vector<2x768xf32> to vector<1x384xf32>
    %14 = arith.addf %13, %8 : vector<1x384xf32>
    %15 = vector.extract_strided_slice %12 {offsets = [0, 0], sizes = [1, 128], strides = [1, 1]} : vector<1x384xf32> to vector<1x128xf32>
    %16 = vector.extract_strided_slice %14 {offsets = [0, 0], sizes = [1, 128], strides = [1, 1]} : vector<1x384xf32> to vector<1x128xf32>
    %17 = arith.addf %15, %16 : vector<1x128xf32>
    %18 = arith.negf %17 : vector<1x128xf32>
    %19 = math.exp %18 : vector<1x128xf32>
    %cst_10 = arith.constant 1.000000e+00 : f32
    %20 = vector.broadcast %cst_10 : f32 to vector<1x128xf32>
    %21 = arith.addf %20, %19 : vector<1x128xf32>
    %22 = arith.divf %20, %21 : vector<1x128xf32>
    %23 = vector.extract_strided_slice %12 {offsets = [0, 128], sizes = [1, 128], strides = [1, 1]} : vector<1x384xf32> to vector<1x128xf32>
    %24 = vector.extract_strided_slice %14 {offsets = [0, 128], sizes = [1, 128], strides = [1, 1]} : vector<1x384xf32> to vector<1x128xf32>
    %25 = arith.addf %23, %24 : vector<1x128xf32>
    %26 = arith.negf %25 : vector<1x128xf32>
    %27 = math.exp %26 : vector<1x128xf32>
    %cst_11 = arith.constant 1.000000e+00 : f32
    %28 = vector.broadcast %cst_11 : f32 to vector<1x128xf32>
    %29 = arith.addf %28, %27 : vector<1x128xf32>
    %30 = arith.divf %28, %29 : vector<1x128xf32>
    %31 = vector.extract_strided_slice %12 {offsets = [0, 256], sizes = [1, 128], strides = [1, 1]} : vector<1x384xf32> to vector<1x128xf32>
    %32 = vector.extract_strided_slice %14 {offsets = [0, 256], sizes = [1, 128], strides = [1, 1]} : vector<1x384xf32> to vector<1x128xf32>
    %33 = arith.mulf %22, %32 : vector<1x128xf32>
    %34 = arith.addf %31, %33 : vector<1x128xf32>
    %35 = math.tanh %34 : vector<1x128xf32>
    %cst_12 = arith.constant 1.000000e+00 : f32
    %36 = vector.broadcast %cst_12 : f32 to vector<1x128xf32>
    %37 = arith.subf %36, %30 : vector<1x128xf32>
    %38 = arith.mulf %37, %35 : vector<1x128xf32>
    %39 = arith.mulf %30, %5 : vector<1x128xf32>
    %40 = arith.addf %38, %39 : vector<1x128xf32>
    %c0_13 = arith.constant 0 : index
    %c0_14 = arith.constant 0 : index
    %41 = vector.load %arg7[%c0_13, %c0_14] : memref<1x128xf32, #tpu.memory_space<vmem>>, vector<1x128xf32>
    tpu.vector_store %arg7[%c0_13, %c0_14], %40 {strides = array<i32>} : memref<1x128xf32, #tpu.memory_space<vmem>>, vector<1x128xf32>,
    %42 = arith.index_cast %arg0 : i32 to index
    %c0_15 = arith.constant 0 : index
    %43 = vector.load %arg6[%42, %c0_15] : memref<1x128xf32, #tpu.memory_space<vmem>>, vector<1x128xf32>
    tpu.vector_store %arg6[%42, %c0_15], %40 {strides = array<i32>} : memref<1x128xf32, #tpu.memory_space<vmem>>, vector<1x128xf32>,
    return
  }
  func.func @transform_0(%arg0: i32, %arg1: memref<1xi32, #tpu.memory_space<smem>>) -> (i32, i32, i32) {
    %0 = arith.index_cast %arg0 : i32 to index
    %1 = memref.load %arg1[%0] : memref<1xi32, #tpu.memory_space<smem>>
    %c0_i32 = arith.constant 0 : i32
    %c0_i32_0 = arith.constant 0 : i32
    %c0_i32_1 = arith.constant 0 : i32
    return %1, %c0_i32, %c0_i32_0 : i32, i32, i32
  }
  func.func @transform_1(%arg0: i32, %arg1: memref<1xi32, #tpu.memory_space<smem>>) -> (i32, i32) {
    %c0_i32 = arith.constant 0 : i32
    %c0_i32_0 = arith.constant 0 : i32
    %c0_i32_1 = arith.constant 0 : i32
    return %c0_i32, %c0_i32_0 : i32, i32
  }
  func.func @transform_2(%arg0: i32, %arg1: memref<1xi32, #tpu.memory_space<smem>>) -> (i32, i32) {
    %c0_i32 = arith.constant 0 : i32
    %c0_i32_0 = arith.constant 0 : i32
    %c0_i32_1 = arith.constant 0 : i32
    return %c0_i32, %c0_i32_0 : i32, i32
  }
  func.func @transform_3(%arg0: i32, %arg1: memref<1xi32, #tpu.memory_space<smem>>) -> (i32, i32) {
    %c0_i32 = arith.constant 0 : i32
    %c0_i32_0 = arith.constant 0 : i32
    %c0_i32_1 = arith.constant 0 : i32
    return %c0_i32, %c0_i32_0 : i32, i32
  }
  func.func @transform_4(%arg0: i32, %arg1: memref<1xi32, #tpu.memory_space<smem>>) -> (i32, i32) {
    %c0_i32 = arith.constant 0 : i32
    %c0_i32_0 = arith.constant 0 : i32
    %c0_i32_1 = arith.constant 0 : i32
    return %c0_i32, %c0_i32_0 : i32, i32
  }
}

</mosaic_0001>

<bundles_post_ra>
// kernel: tpu_custom_call.1
= control target key start
LH: loop header
LB: loop body
LE: loop exit
PB: predicated region body
PF: predicated region fallthrough
CT: control target
= control target key end

     0   :  { %11 = vsyncpa [#allocation6], 0  ;;  %s584_s0 = inlined_call_operand.<no memory space> [shape: s32[1], index: 0, kind: input, shape index: {}]   ;;  %s585_s1 = inlined_call_operand.hbm [shape: f32[16,1,128], index: 1, kind: input, shape index: {}]   ;;  %s586_s2 = inlined_call_operand.hbm [shape: f32[128,768], index: 2, kind: input, shape index: {}]   ;;  %s587_s3 = inlined_call_operand.hbm [shape: f32[2,384], index: 3, kind: input, shape index: {}]   ;;  %s588_s4 = inlined_call_operand.vmem [shape: f32[1,128], index: 4, kind: input, shape index: {}]   ;;  %s589_s5 = inlined_call_operand.hbm [shape: f32[1,128], index: 5, kind: output, shape index: {}]  }
   0x1   :  { %12 = vsyncpa [#allocation9], 0  ;;  %s31_s20 = sshll.u32 %s586_s2, 4  ;;  %s32_s20 = int_to_ptr.hbm [resolvable:$true] %s31_s20 }
   0x2   :  { %13 = vsyncpa [#allocation7], 0  ;;  %s516_s21 = smov [#allocation8]   ;;  %s19_s27 = scalar_lea.hbm %s585_s1, %s584_s0 }
   0x3   :  { %s33_s22 = sshll.u32 %s516_s21, 4  ;;  %s517_s28 = smov 768   ;;  %s34_s22 = int_to_ptr.vmem [resolvable:$true] %s33_s22 }
   0x4   :  { %s518_s29 = smov 48   ;;  %s21_s30 = sshll.u32 %s19_s27, 4  ;;  %s22_s30 = int_to_ptr.hbm [resolvable:$true] %s21_s30 }
   0x5   :  { %39 = dma.hbm_to_vmem [thread:$0]  %s32_s20, 12288, %s34_s22, [#allocation9], %s517_s28, %s517_s28, %s518_s29  }
   0x6   :  { %s519_s6 = smov [#allocation5]   ;;  %s45_s9 = sshll.u32 %s587_s3, 4  ;;  %s46_s9 = int_to_ptr.hbm [resolvable:$true] %s45_s9 }
   0x7   :  { %s23_s7 = sshll.u32 %s519_s6, 4  ;;  %s438_s10 = sshra.s32 %s22_s30, 4  ;;  %s24_s7 = int_to_ptr.vmem [resolvable:$true] %s23_s7  ;;  %s439_s10 = int_to_ptr.hbm [resolvable:$true] %s438_s10 }
   0x8   :  { %s440_s11 = scalar_lea.hbm %s439_s10, 1  ;;  %s442_s0 = scalar_lea.hbm %s585_s1, 16 }
   0x9   :  { %p441_p0 = scmp.ne.s32.totalorder %s439_s10, %s440_s11  ;;  %p443_p1 = scmp.lt.s32.totalorder %s439_s10, %s585_s1 }
   0xa   :  { %p444_p2 = scmp.lt.s32.totalorder %s442_s0, %s440_s11 }
   0xc   :  { %p445_p3 = por %p444_p2, %p443_p1 }
   0xe   :  { %p446_p4 = pnand %p445_p3, %p441_p0 }
  0x10   :  { %449 = shalt.err (!%p446_p4)
}
  0x11   :  { %26 = dma.hbm_to_vmem [thread:$0]  %s22_s30, 16, %s24_s7, [#allocation6]  }
  0x12   :  { %s520_s16 = smov [#allocation10]  }
  0x13   :  { %s47_s3 = sshll.u32 %s520_s16, 4  ;;  %s48_s3 = int_to_ptr.vmem [resolvable:$true] %s47_s3 }
  0x14   :  { %50 = dma.hbm_to_vmem [thread:$0]  %s46_s9, 96, %s48_s3, [#allocation9]  }
  0x15   :  { %510 = dma.done.wait [#allocation6], 16  }
  0x16   :  { %511 = vsyncadd [#allocation6], 4294967280 }
  0x17   :  { %512 = dma.done.wait [#allocation9], 12384  }
  0x18   :  { %513 = vsyncadd [#allocation9], 4294954912  ;;  %v164_v0 = vld [vmem:[#allocation8 + $0x2d0] sm:$0xff]  ;;  %v158_v1 = vld [vmem:[#allocation8 + $0x2a0] sm:$0xff]  ;;  %vm176_vm0 = vcmask 1040384   ;;  %s383_s21 = sshll.u32 %s589_s5, 4  ;;  %s384_s21 = int_to_ptr.hbm [resolvable:$true] %s383_s21 }
  0x19   :  { %v167_v2 = vld [vmem:[#allocation8 + $0x2e8] sm:$0xff]  ;;  %178 = vmatpush.msra.mxu0 %v164_v0  ;;  %v161_v3 = vld [vmem:[#allocation8 + $0x2b8] sm:$0xff]  ;;  %v152_v4 = vld [vmem:[#allocation8 + $0x270] sm:$0xff] }
  0x1a   :  { %238 = vmatpush.msra.mxu3 %v167_v2  ;;  %v155_v5 = vld [vmem:[#allocation8 + $0x288] sm:$0xff]  ;;  %v165_v6 = vld [vmem:[#allocation8 + $0x2d8] sm:$0xff]  ;;  %v146_v8 = vld [vmem:[#allocation8 + $0x240] sm:$0xff] }
  0x1b   :  { %179 = vmatpush.msra.mxu0 %v158_v1  ;;  %v159_v7 = vld [vmem:[#allocation8 + $0x2a8] sm:$0xff]  ;;  %198 = vmatpush.msra.mxu1 %v165_v6  ;;  %v149_v9 = vld [vmem:[#allocation8 + $0x258] sm:$0xff]  ;;  %v140_v11 = vld [vmem:[#allocation8 + $0x210] sm:$0xff] }
  0x1c   :  { %239 = vmatpush.msra.mxu3 %v161_v3  ;;  %v153_v10 = vld [vmem:[#allocation8 + $0x278] sm:$0xff]  ;;  %v143_v12 = vld [vmem:[#allocation8 + $0x228] sm:$0xff]  ;;  %v134_v14 = vld [vmem:[#allocation8 + $0x1e0] sm:$0xff] }
  0x1d   :  { %180 = vmatpush.msra.mxu0 %v152_v4  ;;  %199 = vmatpush.msra.mxu1 %v159_v7  ;;  %v147_v13 = vld [vmem:[#allocation8 + $0x248] sm:$0xff]  ;;  %v137_v15 = vld [vmem:[#allocation8 + $0x1f8] sm:$0xff]  ;;  %v128_v17 = vld [vmem:[#allocation8 + $0x1b0] sm:$0xff] }
  0x1e   :  { %240 = vmatpush.msra.mxu3 %v155_v5  ;;  %v141_v16 = vld [vmem:[#allocation8 + $0x218] sm:$0xff]  ;;  %v131_v18 = vld [vmem:[#allocation8 + $0x1c8] sm:$0xff]  ;;  %v122_v20 = vld [vmem:[#allocation8 + $0x180] sm:$0xff] }
  0x1f   :  { %181 = vmatpush.msra.mxu0 %v146_v8  ;;  %200 = vmatpush.msra.mxu1 %v153_v10  ;;  %v135_v19 = vld [vmem:[#allocation8 + $0x1e8] sm:$0xff]  ;;  %v125_v21 = vld [vmem:[#allocation8 + $0x198] sm:$0xff]  ;;  %v116_v23 = vld [vmem:[#allocation8 + $0x150] sm:$0xff] }
  0x20   :  { %241 = vmatpush.msra.mxu3 %v149_v9  ;;  %v129_v22 = vld [vmem:[#allocation8 + $0x1b8] sm:$0xff]  ;;  %v119_v24 = vld [vmem:[#allocation8 + $0x168] sm:$0xff]  ;;  %v110_v27 = vld [vmem:[#allocation8 + $0x120] sm:$0xff] }
  0x21   :  { %182 = vmatpush.msra.mxu0 %v140_v11  ;;  %201 = vmatpush.msra.mxu1 %v147_v13  ;;  %v123_v25 = vld [vmem:[#allocation8 + $0x188] sm:$0xff]  ;;  %v70_v26 = vld [vmem:[%s588_s4] sm:$0x1]  ;;  %v166_v30 = vld [vmem:[#allocation8 + $0x2e0] sm:$0xff]  ;;  %s521_s4 = smov [#allocation11]  }
  0x22   :  { %242 = vmatpush.msra.mxu3 %v143_v12  ;;  %v113_v28 = vld [vmem:[#allocation8 + $0x138] sm:$0xff]  ;;  %71 = vst [vmem:[#allocation2] sm:$0x1] %v70_v26  ;;  %v104_v31 = vld [vmem:[#allocation8 + $0xf0] sm:$0xff]  ;;  %v107_v32 = vld [vmem:[#allocation8 + $0x108] sm:$0xff]  ;;  %218 = vmatpush.msra.mxu2 %v166_v30  ;;  %s381_s18 = sshll.u32 %s521_s4, 4  ;;  %s382_s18 = int_to_ptr.vmem [resolvable:$true] %s381_s18 }
  0x23   :  { %183 = vmatpush.msra.mxu0 %v134_v14  ;;  %202 = vmatpush.msra.mxu1 %v141_v16  ;;  %v117_v29 = vld [vmem:[#allocation8 + $0x158] sm:$0xff]  ;;  %v160_v33 = vld [vmem:[#allocation8 + $0x2b0] sm:$0xff]  ;;  %v111_v34 = vld [vmem:[#allocation8 + $0x128] sm:$0xff] }
  0x24   :  { %243 = vmatpush.msra.mxu3 %v137_v15  ;;  %v154_v35 = vld [vmem:[#allocation8 + $0x280] sm:$0xff]  ;;  %v101_v37 = vld [vmem:[#allocation8 + $0xd8] sm:$0xff]  ;;  %219 = vmatpush.msra.mxu2 %v160_v33  ;;  %v148_v39 = vld [vmem:[#allocation8 + $0x250] sm:$0xff] }
  0x25   :  { %184 = vmatpush.msra.mxu0 %v128_v17  ;;  %203 = vmatpush.msra.mxu1 %v135_v19  ;;  %v98_v36 = vld [vmem:[#allocation8 + $0xc0] sm:$0xff]  ;;  %v105_v38 = vld [vmem:[#allocation8 + $0xf8] sm:$0xff]  ;;  %v92_v40 = vld [vmem:[#allocation8 + $0x90] sm:$0xff] }
  0x26   :  { %244 = vmatpush.msra.mxu3 %v131_v18  ;;  %v95_v41 = vld [vmem:[#allocation8 + $0xa8] sm:$0xff]  ;;  %220 = vmatpush.msra.mxu2 %v154_v35  ;;  %v142_v43 = vld [vmem:[#allocation8 + $0x220] sm:$0xff]  ;;  %v89_v45 = vld [vmem:[#allocation8 + $0x78] sm:$0xff] }
  0x27   :  { %185 = vmatpush.msra.mxu0 %v122_v20  ;;  %204 = vmatpush.msra.mxu1 %v129_v22  ;;  %v99_v42 = vld [vmem:[#allocation8 + $0xc8] sm:$0xff]  ;;  %v86_v44 = vld [vmem:[#allocation8 + $0x60] sm:$0xff]  ;;  %v93_v46 = vld [vmem:[#allocation8 + $0x98] sm:$0xff] }
  0x28   :  { %245 = vmatpush.msra.mxu3 %v125_v21  ;;  %221 = vmatpush.msra.mxu2 %v148_v39  ;;  %v136_v48 = vld [vmem:[#allocation8 + $0x1f0] sm:$0xff]  ;;  %v83_v50 = vld [vmem:[#allocation8 + $0x48] sm:$0xff]  ;;  %v72_v51 = vld [vmem:[#allocation5] sm:$0x1] }
  0x29   :  { %186 = vmatpush.msra.mxu0 %v116_v23  ;;  %205 = vmatpush.msra.mxu1 %v123_v25  ;;  %v403_v47 = vld [vmem:[#allocation2] ss:$0 sm:$0xff]  ;;  %v80_v49 = vld [vmem:[#allocation8 + $0x30] sm:$0xff]  ;;  %v87_v52 = vld [vmem:[#allocation8 + $0x68] sm:$0xff] }
  0x2a   :  { %246 = vmatpush.msra.mxu3 %v119_v24  ;;  %222 = vmatpush.msra.mxu2 %v142_v43  ;;  %v130_v53 = vld [vmem:[#allocation8 + $0x1c0] sm:$0xff]  ;;  %v77_v55 = vld [vmem:[#allocation8 + $0x18] sm:$0xff]  ;;  %v168_v56 = vld [vmem:[#allocation8 + $0x2f0] sm:$0xff]  ;;  %v573_v57 = vsel %vm176_vm0, %v72_v51, %v403_v47 }
  0x2b   :  { %187 = vmatpush.msra.mxu0 %v110_v27  ;;  %206 = vmatpush.msra.mxu1 %v117_v29  ;;  %v74_v54 = vld [vmem:[#allocation8] sm:$0xff]  ;;  %v81_v58 = vld [vmem:[#allocation8 + $0x38] sm:$0xff]  ;;  %v124_v60 = vld [vmem:[#allocation8 + $0x190] sm:$0xff] }
  0x2c   :  { %247 = vmatpush.msra.mxu3 %v113_v28  ;;  %223 = vmatpush.msra.mxu2 %v136_v48  ;;  %v162_v59 = vld [vmem:[#allocation8 + $0x2c0] sm:$0xff]  ;;  %v75_v61 = vld [vmem:[#allocation8 + $0x8] sm:$0xff]  ;;  %v156_v62 = vld [vmem:[#allocation8 + $0x290] sm:$0xff] }
  0x2d   :  { %188 = vmatpush.msra.mxu0 %v104_v31  ;;  %207 = vmatpush.msra.mxu1 %v111_v34  ;;  %v169_v63 = vld [vmem:[#allocation8 + $0x2f8] sm:$0xff]  ;;  %v118_v0 = vld [vmem:[#allocation8 + $0x160] sm:$0xff]  ;;  %v163_v2 = vld [vmem:[#allocation8 + $0x2c8] sm:$0xff] }
  0x2e   :  { %248 = vmatpush.msra.mxu3 %v107_v32  ;;  %224 = vmatpush.msra.mxu2 %v130_v53  ;;  %v150_v1 = vld [vmem:[#allocation8 + $0x260] sm:$0xff]  ;;  %v112_v3 = vld [vmem:[#allocation8 + $0x130] sm:$0xff]  ;;  %v157_v5 = vld [vmem:[#allocation8 + $0x298] sm:$0xff] }
  0x2f   :  { %189 = vmatpush.msra.mxu0 %v98_v36  ;;  %208 = vmatpush.msra.mxu1 %v105_v38  ;;  %v144_v4 = vld [vmem:[#allocation8 + $0x230] sm:$0xff]  ;;  %v106_v6 = vld [vmem:[#allocation8 + $0x100] sm:$0xff]  ;;  %v151_v8 = vld [vmem:[#allocation8 + $0x268] sm:$0xff] }
  0x30   :  { %249 = vmatpush.msra.mxu3 %v101_v37  ;;  %225 = vmatpush.msra.mxu2 %v124_v60  ;;  %v138_v7 = vld [vmem:[#allocation8 + $0x200] sm:$0xff]  ;;  %v100_v9 = vld [vmem:[#allocation8 + $0xd0] sm:$0xff]  ;;  %v145_v11 = vld [vmem:[#allocation8 + $0x238] sm:$0xff] }
  0x31   :  { %190 = vmatpush.msra.mxu0 %v92_v40  ;;  %209 = vmatpush.msra.mxu1 %v99_v42  ;;  %v132_v10 = vld [vmem:[#allocation8 + $0x1d0] sm:$0xff]  ;;  %v94_v12 = vld [vmem:[#allocation8 + $0xa0] sm:$0xff]  ;;  %v139_v14 = vld [vmem:[#allocation8 + $0x208] sm:$0xff] }
  0x32   :  { %250 = vmatpush.msra.mxu3 %v95_v41  ;;  %226 = vmatpush.msra.mxu2 %v118_v0  ;;  %v126_v13 = vld [vmem:[#allocation8 + $0x1a0] sm:$0xff]  ;;  %v88_v15 = vld [vmem:[#allocation8 + $0x70] sm:$0xff]  ;;  %v133_v17 = vld [vmem:[#allocation8 + $0x1d8] sm:$0xff] }
  0x33   :  { %191 = vmatpush.msra.mxu0 %v86_v44  ;;  %210 = vmatpush.msra.mxu1 %v93_v46  ;;  %v120_v16 = vld [vmem:[#allocation8 + $0x170] sm:$0xff]  ;;  %v82_v18 = vld [vmem:[#allocation8 + $0x40] sm:$0xff]  ;;  %v127_v20 = vld [vmem:[#allocation8 + $0x1a8] sm:$0xff] }
  0x34   :  { %251 = vmatpush.msra.mxu3 %v89_v45  ;;  %227 = vmatpush.msra.mxu2 %v112_v3  ;;  %v114_v19 = vld [vmem:[#allocation8 + $0x140] sm:$0xff]  ;;  %v76_v21 = vld [vmem:[#allocation8 + $0x10] sm:$0xff]  ;;  %v121_v23 = vld [vmem:[#allocation8 + $0x178] sm:$0xff] }
  0x35   :  { %192 = vmatpush.msra.mxu0 %v80_v49  ;;  %211 = vmatpush.msra.mxu1 %v87_v52  ;;  %v108_v22 = vld [vmem:[#allocation8 + $0x110] sm:$0xff]  ;;  %v102_v24 = vld [vmem:[#allocation8 + $0xe0] sm:$0xff]  ;;  %v115_v25 = vld [vmem:[#allocation8 + $0x148] sm:$0xff] }
  0x36   :  { %252 = vmatpush.msra.mxu3 %v83_v50  ;;  %228 = vmatpush.msra.mxu2 %v106_v6  ;;  %v96_v26 = vld [vmem:[#allocation8 + $0xb0] sm:$0xff]  ;;  %v109_v27 = vld [vmem:[#allocation8 + $0x118] sm:$0xff]  ;;  %v90_v28 = vld [vmem:[#allocation8 + $0x80] sm:$0xff] }
  0x37   :  { %193 = vmatpush.msra.mxu0 %v74_v54  ;;  %212 = vmatpush.msra.mxu1 %v81_v58  ;;  %v103_v29 = vld [vmem:[#allocation8 + $0xe8] sm:$0xff]  ;;  %v84_v30 = vld [vmem:[#allocation8 + $0x50] sm:$0xff]  ;;  %v97_v31 = vld [vmem:[#allocation8 + $0xb8] sm:$0xff] }
  0x38   :  { %253 = vmatpush.msra.mxu3 %v77_v55  ;;  %194 = vmatmul.f32.vlgmr.msra.gmra.mxu0 %v573_v57  ;;  %v78_v32 = vld [vmem:[#allocation8 + $0x20] sm:$0xff]  ;;  %v91_v33 = vld [vmem:[#allocation8 + $0x88] sm:$0xff]  ;;  %v85_v34 = vld [vmem:[#allocation8 + $0x58] sm:$0xff] }
  0x39   :  { %258 = vmatpush.msrb.mxu0 %v168_v56  ;;  %254 = vmatmul.f32.vlgmr.msra.gmra.mxu3 %v573_v57  ;;  %v79_v35 = vld [vmem:[#allocation8 + $0x28] sm:$0xff]  ;;  %v172_v36 = vld [vmem:[#allocation10 + $0x1] ss:$2 sm:$0x7] }
  0x3a   :  { %213 = vmatpush.msra.mxu1 %v75_v61  ;;  %229 = vmatpush.msra.mxu2 %v100_v9  ;;  %v170_v37 = vld [vmem:[#allocation10] ss:$2 sm:$0x7]  ;;  %v309_v38 = vperm.slane %v172_v36, 0  ;;  %v310_v50 = vperm.slane %v172_v36, 1 }
  0x3b   :  { %259 = vmatpush.msrb.mxu0 %v162_v59  ;;  %214 = vmatmul.f32.vlgmr.msra.gmra.mxu1 %v573_v57  ;;  %v299_v39 = vperm.slane %v170_v37, 0  ;;  %v300_v49 = vperm.slane %v170_v37, 1  ;;  %v301_v9 = vperm.slane %v170_v37, 2 }
  0x3c   :  { %278 = vmatpush.msrb.mxu1 %v169_v63  ;;  %230 = vmatpush.msra.mxu2 %v94_v12 }
  0x3d   :  { %260 = vmatpush.msrb.mxu0 %v156_v62  ;;  %v311_v62 = vperm.slane %v172_v36, 2 }
  0x3e   :  { %279 = vmatpush.msrb.mxu1 %v163_v2  ;;  %231 = vmatpush.msra.mxu2 %v88_v15 }
  0x3f   :  { %261 = vmatpush.msrb.mxu0 %v150_v1 }
  0x40   :  { %280 = vmatpush.msrb.mxu1 %v157_v5  ;;  %232 = vmatpush.msra.mxu2 %v82_v18 }
  0x41   :  { %262 = vmatpush.msrb.mxu0 %v144_v4 }
  0x42   :  { %281 = vmatpush.msrb.mxu1 %v151_v8  ;;  %233 = vmatpush.msra.mxu2 %v76_v21 }
  0x43   :  { %263 = vmatpush.msrb.mxu0 %v138_v7  ;;  %234 = vmatmul.f32.vlgmr.msra.gmra.mxu2 %v573_v57 }
  0x44   :  { %282 = vmatpush.msrb.mxu1 %v145_v11 }
  0x45   :  { %264 = vmatpush.msrb.mxu0 %v132_v10 }
  0x46   :  { %283 = vmatpush.msrb.mxu1 %v139_v14 }
  0x47   :  { %265 = vmatpush.msrb.mxu0 %v126_v13 }
  0x48   :  { %284 = vmatpush.msrb.mxu1 %v133_v17 }
  0x49   :  { %266 = vmatpush.msrb.mxu0 %v120_v16 }
  0x4a   :  { %285 = vmatpush.msrb.mxu1 %v127_v20 }
  0x4b   :  { %267 = vmatpush.msrb.mxu0 %v114_v19 }
  0x4c   :  { %286 = vmatpush.msrb.mxu1 %v121_v23 }
  0x4d   :  { %268 = vmatpush.msrb.mxu0 %v108_v22 }
  0x4e   :  { %287 = vmatpush.msrb.mxu1 %v115_v25 }
  0x4f   :  { %269 = vmatpush.msrb.mxu0 %v102_v24  ;;  %v73_v24 = vld [vmem:[#allocation2] sm:$0x1] }
  0x50   :  { %288 = vmatpush.msrb.mxu1 %v109_v27 }
  0x51   :  { %270 = vmatpush.msrb.mxu0 %v96_v26 }
  0x52   :  { %289 = vmatpush.msrb.mxu1 %v103_v29 }
  0x53   :  { %271 = vmatpush.msrb.mxu0 %v90_v28 }
  0x54   :  { %290 = vmatpush.msrb.mxu1 %v97_v31 }
  0x55   :  { %272 = vmatpush.msrb.mxu0 %v84_v30 }
  0x56   :  { %291 = vmatpush.msrb.mxu1 %v91_v33 }
  0x57   :  { %273 = vmatpush.msrb.mxu0 %v78_v32 }
  0x58   :  { %274 = vmatmul.f32.vlgmr.msrb.gmra.mxu0 %v573_v57  ;;  %292 = vmatpush.msrb.mxu1 %v85_v34 }
  0x5a   :  { %293 = vmatpush.msrb.mxu1 %v79_v35 }
  0x5b   :  { %294 = vmatmul.f32.vlgmr.msrb.gmra.mxu1 %v573_v57 }
  0xb5   :  { %v195_v40 = vpop.f32.mrf.mxu0 }
  0xb6   :  { %v305_v43 = vadd.f32 %v299_v39, %v195_v40 }
  0xb8   :  { %v215_v52 = vpop.f32.mrf.mxu1 }
  0xb9   :  { %v306_v55 = vadd.f32 %v300_v49, %v215_v52 }
  0xbc   :  { %v255_v41 = vpop.f32.mrf.mxu3 }
  0xbd   :  { %v315_v42 = vadd.f32 %v309_v38, %v255_v41 }
  0xbf   :  { %v319_v44 = vrot.slane %v315_v42, 1 }
  0xc1   :  { %v321_v45 = vadd.f32 %v319_v44, %v305_v43 }
  0xc3   :  { %v395_v46 = vmul.f32 -1.442695, %v321_v45 }
  0xc5   :  { %404 = vpow2.f32 %v395_v46 }
  0xc6   :  { %v235_v11 = vpop.f32.mrf.mxu2 }
  0xc7   :  { %v307_v13 = vadd.f32 %v301_v9, %v235_v11 }
  0xcb   :  { %v405_v47 = vpop.eup %404 }
  0xcc   :  { %v325_v48 = vadd.f32 1.0, %v405_v47 }
  0xce   :  { %406 = vrcp.f32 %v325_v48  ;;  %vm331_vm1 = vweird.f32 %v325_v48  ;;  %v337_v0 = vand.u32 2147483648, %v325_v48  ;;  %v335_v2 = vand.u32 2147483647, %v325_v48 }
  0xd0   :  { %v338_v5 = vor.u32 1.1754944e-38, %v337_v0  ;;  %vm336_vm4 = vcmp.eq.f32.partialorder %v335_v2, 8.507059e+37 }
  0xd4   :  { %v407_v51 = vpop.eup %406 }
  0xd5   :  { %v275_v53 = vpop.f32.mrf.mxu0  ;;  %v327_v54 = vmul.f32 %v407_v51, %v325_v48  ;;  %vm332_vm2 = vweird.f32 %v407_v51 }
  0xd6   :  { %v316_v56 = vadd.f32 %v310_v50, %v275_v53  ;;  %vm333_vm3 = vmor %vm331_vm1, %vm332_vm2 }
  0xd7   :  { %v328_v58 = vsub.f32 1.0, %v327_v54 }
  0xd8   :  { %v342_v57 = vrot.slane %v316_v56, 1  ;;  %v295_v63 = vpop.f32.mrf.mxu1 }
  0xd9   :  { %v329_v61 = vmul.f32 %v407_v51, %v328_v58  ;;  %v317_v3 = vadd.f32 %v311_v62, %v295_v63 }
  0xda   :  { %v344_v59 = vadd.f32 %v342_v57, %v306_v55 }
  0xdb   :  { %v330_v1 = vadd.f32 %v407_v51, %v329_v61  ;;  %v365_v8 = vrot.slane %v317_v3, 1 }
  0xdc   :  { %v396_v60 = vmul.f32 -1.442695, %v344_v59 }
  0xdd   :  { %v334_v7 = vsel %vm333_vm3, %v407_v51, %v330_v1 }
  0xde   :  { %408 = vpow2.f32 %v396_v60  ;;  %v339_v10 = vsel %vm336_vm4, %v338_v5, %v334_v7 }
  0xdf   :  { %v367_v12 = vmul.f32 %v365_v8, %v339_v10 }
  0xe1   :  { %v368_v16 = vadd.f32 %v367_v12, %v307_v13 }
  0xe4   :  { %v409_v4 = vpop.eup %408 }
  0xe5   :  { %v348_v6 = vadd.f32 1.0, %v409_v4 }
  0xe7   :  { %410 = vrcp.f32 %v348_v6  ;;  %v360_v18 = vand.u32 2147483648, %v348_v6  ;;  %v358_v20 = vand.u32 2147483647, %v348_v6  ;;  %vm354_vm6 = vweird.f32 %v348_v6 }
  0xe8   :  { %412 = vtanh.f32 %v368_v16 }
  0xe9   :  { %v361_v22 = vor.u32 1.1754944e-38, %v360_v18  ;;  %vm359_vm8 = vcmp.eq.f32.partialorder %v358_v20, 8.507059e+37 }
  0xed   :  { %v411_v14 = vpop.eup %410 }
  0xee   :  { %v350_v15 = vmul.f32 %v411_v14, %v348_v6  ;;  %vm355_vm5 = vweird.f32 %v411_v14  ;;  %v413_v27 = vpop.eup %412 }
  0xef   :  { %vm356_vm7 = vmor %vm354_vm6, %vm355_vm5 }
  0xf0   :  { %v351_v17 = vsub.f32 1.0, %v350_v15 }
  0xf2   :  { %v352_v19 = vmul.f32 %v411_v14, %v351_v17 }
  0xf4   :  { %v353_v21 = vadd.f32 %v411_v14, %v352_v19 }
  0xf6   :  { %v357_v23 = vsel %vm356_vm7, %v411_v14, %v353_v21 }
  0xf7   :  { %v362_v25 = vsel %vm359_vm8, %v361_v22, %v357_v23 }
  0xf8   :  { %v370_v26 = vsub.f32 1.0, %v362_v25  ;;  %v372_v29 = vmul.f32 %v362_v25, %v73_v24 }
  0xfa   :  { %v371_v28 = vmul.f32 %v413_v27, %v370_v26 }
  0xfc   :  { %v373_v30 = vadd.f32 %v372_v29, %v371_v28 }
  0xfe   :  { %374 = vst [vmem:[#allocation2] sm:$0x1] %v373_v30 }
  0xff   :  { %375 = vst [vmem:[#allocation11] sm:$0x1] %v373_v30 }
 0x100   :  { %386 = dma.vmem_to_hbm [thread:$0]  %s382_s18, 16, %s384_s21, [#allocation7]  }
 0x101   :  { %514 = dma.done.wait [#allocation7], 16  }
 0x102   :  { %515 = vsyncadd [#allocation7], 4294967280 }
 0x103   :  { %391 = vsyncpa [#allocation6], 1 }
 0x104   :  { %392 = vsyncpa [#allocation9], 1 }
 0x105   :  { %393 = vsyncpa [#allocation7], 1 }

</bundles_post_ra>
